<compile_context>
chip_gen: v7x
topology: tpu7x:2x2x1
jax: 0.10.0
libtpu: 0.0.40
codegen_flags: <defaults>
</compile_context>

<pallas_src>
import jax
import jax.numpy as jnp
from jax import lax
from jax.experimental import pallas as pl
from jax.experimental.pallas import tpu as pltpu


def mlp_fusion_kernel(x_ref, wt_ref, b_ref, o_ref):
    # x_ref: (TM, K), wt_ref: (K, N), b_ref: (1, N), o_ref: (TM, N)
    x = x_ref[...]

    # Linear: x @ W^T + b  (MXU, f32 accumulation). Weight is already (K, N).
    y = jnp.dot(x, wt_ref[...], preferred_element_type=jnp.float32) + b_ref[...]

    # F.normalize(y, p=2, dim=-1, eps=1e-12)  ==  y * rsqrt(max(sum(y^2), 1e-24))
    sq_sum = jnp.sum(y * y, axis=-1, keepdims=True)
    inv_norm = lax.rsqrt(jnp.maximum(sq_sum, 1e-24))
    o_ref[...] = (y * inv_norm).astype(o_ref.dtype)


def prepare_params(w, b):
    """One-time parameter prep (weights are constants): (N,K) -> (K,N), bias -> (1,N).

    Do this OUTSIDE the per-call hot path so no transpose is re-emitted per call.
    """
    return w.T, b.reshape(1, -1)


def mlp_fusion(x, wt, b2, *, tm=512):
    """x: (M, K) f32, wt: (K, N) pre-transposed weight, b2: (1, N) bias."""
    M, K = x.shape
    Kw, N = wt.shape
    assert Kw == K, "weight / input feature-dim mismatch"

    # Row tile: largest multiple of 8 up to `tm` that does not exceed M.
    # (Weight K*N*4B stays resident; x/out tiles are double-buffered, so the
    #  VMEM footprint is tiny at these feature sizes even on v7x's 64 MiB VMEM.)
    tm_eff = min(tm, M)
    if tm_eff < M:
        tm_eff = max(8, (tm_eff // 8) * 8)
    grid_m = pl.cdiv(M, tm_eff)

    return pl.pallas_call(
        mlp_fusion_kernel,
        out_shape=jax.ShapeDtypeStruct((M, N), x.dtype),
        grid_spec=pltpu.PrefetchScalarGridSpec(
            num_scalar_prefetch=0,
            grid=(grid_m,),
            in_specs=[
                pl.BlockSpec((tm_eff, K), lambda i: (i, 0)),   # streamed rows
                pl.BlockSpec((K, N), lambda i: (0, 0)),        # VMEM-resident weight
                pl.BlockSpec((1, N), lambda i: (0, 0)),        # VMEM-resident bias
            ],
            out_specs=pl.BlockSpec((tm_eff, N), lambda i: (i, 0)),
        ),
        compiler_params=pltpu.CompilerParams(
            # Rows are fully independent -> shard M across TensorCores (v7x).
            dimension_semantics=("parallel",),
        ),
    )(x, wt, b2)


def mlp_fusion_ref(x, w, b):
    y = x @ w.T + b
    norm = jnp.sqrt(jnp.sum(y * y, axis=-1, keepdims=True))
    return y / jnp.maximum(norm, 1e-12)


if __name__ == "__main__":
    # Small shapes consistent with the module: batch=8, input_dim=32, output_dim=64.
    key = jax.random.PRNGKey(0)
    k_x, k_w, k_b = jax.random.split(key, 3)

    M, K, N = 8, 32, 64   # batch, input_dim, output_dim

    x = jax.random.normal(k_x, (M, K), dtype=jnp.float32)
    # Deterministic init mimicking nn.Linear's uniform(-1/sqrt(K), 1/sqrt(K))
    bound = 1.0 / jnp.sqrt(jnp.float32(K))
    w = jax.random.uniform(k_w, (N, K), minval=-bound, maxval=bound, dtype=jnp.float32)
    b = jax.random.uniform(k_b, (N,), minval=-bound, maxval=bound, dtype=jnp.float32)

    # One-time parameter layout prep (outside the hot path).
    wt, b2 = prepare_params(w, b)
    wt = jax.block_until_ready(wt)
    b2 = jax.block_until_ready(b2)

    out = mlp_fusion(x, wt, b2)
    jax.block_until_ready(out)

    ref = mlp_fusion_ref(x, w, b)
    assert out.shape == (M, N)
    assert jnp.allclose(out, ref, atol=1e-5, rtol=1e-5), "mismatch vs reference"

    print("KERNEL_OK")
</pallas_src>

<mosaic_0001>
module attributes {stable_mosaic.version = 11 : i64} {
  func.func @mlp_fusion_kernel(%arg0: i32, %arg1: memref<8x32xf32, #tpu.memory_space<vmem>>, %arg2: memref<32x64xf32, #tpu.memory_space<vmem>>, %arg3: memref<1x64xf32, #tpu.memory_space<vmem>>, %arg4: memref<8x64xf32, #tpu.memory_space<vmem>>) attributes {dimension_semantics = [#tpu.dimension_semantics<parallel>], iteration_bounds = array<i64: 1>, scalar_prefetch = 0 : i64, scratch_operands = 0 : i64, tpu.core_type = #tpu.core_type<tc>, window_params = [{transform_indices = @transform_0, window_bounds = array<i64: 8, 32>}, {pipeline_mode = #tpu.pipeline_mode<synchronous>, transform_indices = @transform_1, window_bounds = array<i64: 32, 64>}, {pipeline_mode = #tpu.pipeline_mode<synchronous>, transform_indices = @transform_2, window_bounds = array<i64: 1, 64>}, {transform_indices = @transform_3, window_bounds = array<i64: 8, 64>}]} {
    %c0 = arith.constant 0 : index
    %c0_0 = arith.constant 0 : index
    %0 = vector.load %arg1[%c0, %c0_0] : memref<8x32xf32, #tpu.memory_space<vmem>>, vector<8x32xf32>
    %c0_1 = arith.constant 0 : index
    %c0_2 = arith.constant 0 : index
    %1 = vector.load %arg2[%c0_1, %c0_2] : memref<32x64xf32, #tpu.memory_space<vmem>>, vector<32x64xf32>
    %cst = arith.constant dense<0.000000e+00> : vector<8x64xf32>
    %2 = tpu.matmul %0, %1, %cst {dimension_numbers = #tpu.dot_dimension_numbers<[1], [0], [0], [1], [0, 0, 1, 1], [], []>} : vector<8x32xf32>, vector<32x64xf32>, vector<8x64xf32> -> vector<8x64xf32>
    %c0_3 = arith.constant 0 : index
    %c0_4 = arith.constant 0 : index
    %3 = vector.load %arg3[%c0_3, %c0_4] : memref<1x64xf32, #tpu.memory_space<vmem>>, vector<1x64xf32>
    %4 = vector.broadcast %3 : vector<1x64xf32> to vector<8x64xf32>
    %5 = arith.addf %2, %4 : vector<8x64xf32>
    %6 = arith.mulf %5, %5 : vector<8x64xf32>
    %cst_5 = arith.constant dense<0.000000e+00> : vector<8xf32>
    %7 = vector.multi_reduction <add>, %6, %cst_5 [1] : vector<8x64xf32> to vector<8xf32>
    %8 = vector.shape_cast %7 : vector<8xf32> to vector<8x1xf32>
    %cst_6 = arith.constant 1.000000e-24 : f32
    %9 = vector.broadcast %cst_6 : f32 to vector<8x1xf32>
    %10 = arith.maximumf %8, %9 : vector<8x1xf32>
    %11 = math.rsqrt %10 : vector<8x1xf32>
    %12 = vector.broadcast %11 : vector<8x1xf32> to vector<8x64xf32>
    %13 = arith.mulf %5, %12 : vector<8x64xf32>
    %c0_7 = arith.constant 0 : index
    %c0_8 = arith.constant 0 : index
    %14 = vector.load %arg4[%c0_7, %c0_8] : memref<8x64xf32, #tpu.memory_space<vmem>>, vector<8x64xf32>
    tpu.vector_store %arg4[%c0_7, %c0_8], %13 {strides = array<i32>} : memref<8x64xf32, #tpu.memory_space<vmem>>, vector<8x64xf32>,
    return
  }
  func.func @transform_0(%arg0: i32) -> (i32, i32) {
    %c0_i32 = arith.constant 0 : i32
    %c0_i32_0 = arith.constant 0 : i32
    return %arg0, %c0_i32 : i32, i32
  }
  func.func @transform_1(%arg0: i32) -> (i32, i32) {
    %c0_i32 = arith.constant 0 : i32
    %c0_i32_0 = arith.constant 0 : i32
    %c0_i32_1 = arith.constant 0 : i32
    return %c0_i32, %c0_i32_0 : i32, i32
  }
  func.func @transform_2(%arg0: i32) -> (i32, i32) {
    %c0_i32 = arith.constant 0 : i32
    %c0_i32_0 = arith.constant 0 : i32
    %c0_i32_1 = arith.constant 0 : i32
    return %c0_i32, %c0_i32_0 : i32, i32
  }
  func.func @transform_3(%arg0: i32) -> (i32, i32) {
    %c0_i32 = arith.constant 0 : i32
    %c0_i32_0 = arith.constant 0 : i32
    return %arg0, %c0_i32 : i32, i32
  }
}

</mosaic_0001>

<bundles_post_ra>
// kernel: tpu_custom_call.1
= control target key start
LH: loop header
LB: loop body
LE: loop exit
PB: predicated region body
PF: predicated region fallthrough
CT: control target
= control target key end

     0   :  { %8 = vsyncpa [#allocation3], 0  ;;  %s332_s0 = inlined_call_operand.hbm [shape: f32[8,32], index: 0, kind: input, shape index: {}]   ;;  %s333_s1 = inlined_call_operand.hbm [shape: f32[32,64], index: 1, kind: input, shape index: {}]   ;;  %s334_s2 = inlined_call_operand.vmem [shape: f32[1,64], index: 2, kind: input, shape index: {}]   ;;  %s335_s3 = inlined_call_operand.hbm [shape: f32[8,64], index: 3, kind: output, shape index: {}]  }
   0x1   :  { %9 = vsyncpa [#allocation6], 0 }
   0x2   :  { %10 = vsyncpa [#allocation4], 0  ;;  %s258_s12 = smov [#allocation2]   ;;  %s259_s14 = smov [#allocation5]  }
   0x3   :  { %s17_s13 = sshll.u32 %s258_s12, 4  ;;  %s26_s15 = sshll.u32 %s259_s14, 4  ;;  %s18_s13 = int_to_ptr.vmem [resolvable:$true] %s17_s13  ;;  %s286_s15 = int_to_ptr.vmem [resolvable:$true] %s26_s15 }
   0x4   :  { %s186_s18 = scalar_lea.hbm %s332_s0, 128 }
   0x5   :  { %p187_p0 = scmp.ne.s32.totalorder %s332_s0, %s186_s18  ;;  %p190_p1 = scmp.lt.u32.totalorder %s186_s18, %s332_s0 }
   0x7   :  { %p192_p2 = pnand %p190_p1, %p187_p0 }
   0x9   :  { %195 = shalt.err (!%p192_p2)
}
   0xa   :  { %s196_s23 = scalar_lea.vmem %s18_s13, 128  ;;  %p201_p4 = scmp.lt.s32.totalorder %s18_s13, %s18_s13 }
   0xb   :  { %p197_p3 = scmp.ne.s32.totalorder %s18_s13, %s196_s23  ;;  %p202_p5 = scmp.lt.s32.totalorder %s196_s23, %s196_s23 }
   0xd   :  { %p203_p6 = por %p202_p5, %p201_p4 }
   0xf   :  { %p204_p7 = pnand %p203_p6, %p197_p3 }
  0x11   :  { %207 = shalt.err (!%p204_p7)
}
  0x12   :  { %20 = dma.hbm_to_vmem [thread:$0]  %s332_s0, 128, %s18_s13, [#allocation3]  }
  0x13   :  { %s208_s28 = scalar_lea.hbm %s333_s1, 512 }
  0x14   :  { %p209_p8 = scmp.ne.s32.totalorder %s333_s1, %s208_s28  ;;  %p212_p9 = scmp.lt.u32.totalorder %s208_s28, %s333_s1 }
  0x16   :  { %p214_p10 = pnand %p212_p9, %p209_p8 }
  0x18   :  { %217 = shalt.err (!%p214_p10)
}
  0x19   :  { %s218_s6 = scalar_lea.vmem %s286_s15, 512  ;;  %p223_p12 = scmp.lt.s32.totalorder %s286_s15, %s286_s15 }
  0x1a   :  { %p219_p11 = scmp.ne.s32.totalorder %s286_s15, %s218_s6  ;;  %p224_p13 = scmp.lt.s32.totalorder %s218_s6, %s218_s6 }
  0x1c   :  { %p225_p0 = por %p224_p13, %p223_p12 }
  0x1e   :  { %p226_p1 = pnand %p225_p0, %p219_p11 }
  0x20   :  { %229 = shalt.err (!%p226_p1)
}
  0x21   :  { %s260_s0 = smov 128   ;;  %s261_s7 = smov 8  }
  0x22   :  { %32 = dma.hbm_to_vmem [thread:$0]  %s333_s1, 512, %s286_s15, [#allocation6], %s260_s0, %s260_s0, %s261_s7  }
  0x23   :  { %252 = dma.done.wait [#allocation3], 128  }
  0x24   :  { %253 = vsyncadd [#allocation3], 4294967168 }
  0x25   :  { %254 = dma.done.wait [#allocation6], 512  }
  0x26   :  { %255 = vsyncadd [#allocation6], 4294966784  ;;  %v262_v0 = vmov 0.0|0.0   ;;  %vm263_vm0 = vmmov 0   ;;  %v264_v1 = vmov 0.0   ;;  %v42_v2 = vld [vmem:[#allocation5] sm:$0xff] }
  0x27   :  { %170 = vmatprep.subr.bf16.mxu0 %v262_v0  ;;  %167 = vmatprep.mubr.msk.f32.mxu0 %vm263_vm0, %v264_v1  ;;  %v43_v3 = vld [vmem:[#allocation5 + $0x8] sm:$0xff]  ;;  %v44_v4 = vld [vmem:[#allocation5 + $0x10] sm:$0xff]  ;;  %v45_v6 = vld [vmem:[#allocation5 + $0x18] sm:$0xff]  ;;  %vm53_vm1 = vcmask 261120   ;;  %vm128_vm2 = vcmask 523264   ;;  %s265_s11 = smov [#allocation7]  }
  0x28   :  { %v171_v5 = vpack.c.bf16 %v43_v3, %v42_v2  ;;  %v174_v7 = vpack.c.bf16 %v45_v6, %v44_v4  ;;  %v41_v8 = vld [vmem:[#allocation2] sm:$0xff]  ;;  %s142_s12 = sshll.u32 %s265_s11, 4  ;;  %s143_s12 = int_to_ptr.vmem [resolvable:$true] %s142_s12 }
  0x29   :  { %v152_v9 = vld [vmem:[%s334_s2] ss:$0 sm:$0xff]  ;;  %s230_s13 = scalar_lea.vmem %s143_s12, 128  ;;  %p235_p3 = scmp.lt.s32.totalorder %s143_s12, %s143_s12 }
  0x2a   :  { %172 = vmatpush3.bf16.msra.mxu0 %v171_v5  ;;  %p231_p2 = scmp.ne.s32.totalorder %s143_s12, %s230_s13  ;;  %p236_p4 = scmp.lt.s32.totalorder %s230_s13, %s230_s13 }
  0x2b   :  { %173 = vmatprep.subr.bf16.mxu0 %v262_v0 }
  0x2c   :  { %p237_p5 = por %p236_p4, %p235_p3 }
  0x2e   :  { %175 = vmatpush3.bf16.msra.mxu0 %v174_v7  ;;  %p238_p6 = pnand %p237_p5, %p231_p2 }
  0x31   :  { %168 = vmatmul.mubr.msk.f32.vlgmr.msra.gmra.mrb[0].mxu0 %vm53_vm1, %v41_v8 }
 0x104   :  { %v123_v10 = vpop.f32.mrb[0].mxu0 }
 0x105   :  { %v124_v11 = vadd.f32 %v152_v9, %v123_v10  ;;  %v169_v12 = vpop.f32.mrb[1].mxu0 }
 0x107   :  { %v127_v13 = vmul.f32 %v124_v11, %v124_v11 }
 0x109   :  { %v129_v14 = vsel %vm128_vm2, %v127_v13, 0.0 }
 0x10a   :  { %130 = vadd.xlane.f32.xlu0 %v129_v14 }
 0x197   :  { %v131_v15 = vpop.xlane.xlu0 %130 }
 0x198   :  { %v132_v16 = vmax.f32 %v131_v15, 1e-24 }
 0x19a   :  { %184 = vrsqrt.f32 %v132_v16 }
 0x1a4   :  { %v185_v17 = vpop.eup %184 }
 0x1a5   :  { %v134_v18 = vmul.f32 %v185_v17, %v124_v11 }
 0x1a7   :  { %135 = vst.msk [vmem:[#allocation7] sm:$0xff] %vm128_vm2, %v134_v18 }
 0x1a8   :  { %241 = shalt.err (!%p238_p6)
}
 0x1a9   :  { %s242_s15 = scalar_lea.hbm %s335_s3, 128 }
 0x1aa   :  { %p243_p7 = scmp.ne.s32.totalorder %s335_s3, %s242_s15  ;;  %p246_p8 = scmp.lt.u32.totalorder %s242_s15, %s335_s3 }
 0x1ac   :  { %p248_p9 = pnand %p246_p8, %p243_p7 }
 0x1ae   :  { %251 = shalt.err (!%p248_p9)
}
 0x1af   :  { %145 = dma.vmem_to_hbm [thread:$0]  %s143_s12, 128, %s335_s3, [#allocation4]  }
 0x1b0   :  { %256 = dma.done.wait [#allocation4], 128  }
 0x1b1   :  { %257 = vsyncadd [#allocation4], 4294967168 }
 0x1b2   :  { %149 = vsyncpa [#allocation3], 1 }
 0x1b3   :  { %150 = vsyncpa [#allocation6], 1 }
 0x1b4   :  { %151 = vsyncpa [#allocation4], 1 }

</bundles_post_ra>
